<compile_context>
chip_gen: v7x
topology: tpu7x:2x2x1
jax: 0.10.0
libtpu: 0.0.40
codegen_flags: <defaults>
</compile_context>

<pallas_src>
import functools
import math

import jax
import jax.numpy as jnp
from jax import lax
from jax.experimental import pallas as pl
from jax.experimental.pallas import tpu as pltpu


_DEF_EPS = 1e-8


def _round_up(a, b):
    return (a + b - 1) // b * b


def _vmem_budgets():
    """Generation-aware (scoped VMEM limit, per-step tile budget, matmul tile cap)."""
    phys = 64 * 1024 * 1024                        # conservative default (v7x per-TC)
    try:
        phys = int(pltpu.get_tpu_info().vmem_capacity_bytes)
    except Exception:
        pass
    if phys >= 96 * 1024 * 1024:                   # v5e / v6e class: 128 MiB physical
        return 64 * 1024 * 1024, 32 * 1024 * 1024, 512
    return 48 * 1024 * 1024, 20 * 1024 * 1024, 256  # v7x class: 64 MiB per TensorCore


_VMEM_LIMIT, _TILE_BUDGET, _MM_TILE_CAP = _vmem_budgets()


def _pick_row_tile(n_rows, h, itemsize, n_arrays):
    """Rows per block, sized by bytes (double-buffered input tiles + f32 temps)."""
    denom = 2 * h * (n_arrays * itemsize + 4)
    tm = (_TILE_BUDGET // max(denom, 1)) // 128 * 128
    if tm < 128:
        # TODO(synk): tile H with (dot, sumsq) partial-sum accumulators for very large H.
        tm = 128
    return n_rows if n_rows <= tm else tm


def _tile_candidates(n, cap):
    """Output-dim tile sizes: the full dim (when n <= cap) or multiples of 128."""
    cands = [n] if n <= cap else []
    t = min(n, cap) // 128 * 128
    while t >= 128:
        if t < n:
            cands.append(t)
        t -= 128
    return cands or [n]


def _fit_resident_tile(b, c, h, itemsize):
    """M tile for the y-resident path, or None if whole-y + whole-H does not fit."""
    for tm in _tile_candidates(b, _MM_TILE_CAP):
        need = (2 * (tm + c) * h * itemsize        # double-buffered x tile + resident y
                + (tm + c) * h * 4                 # f32 temporaries for the norms
                + 3 * tm * c * 4)                  # acc + double-buffered output
        if need <= _TILE_BUDGET:
            return tm
    return None


def _fit_mm_tiles(b, c, hp, itemsize):
    """(tm, tn, tk) for the K/N-tiled matmul; tk is a 128-multiple dividing hp."""
    tks = [t for t in (512, 256, 128) if t <= hp and hp % t == 0] or [hp]
    last = None
    for tk in tks:
        for tm in _tile_candidates(b, _MM_TILE_CAP):
            for tn in _tile_candidates(c, _MM_TILE_CAP):
                need = (2 * (tm + tn) * tk * itemsize   # double-buffered operand tiles
                        + 3 * tm * tn * 4               # acc + double-buffered output
                        + 2 * (tm + tn) * 4)            # inverse-norm vectors
                last = (tm, tn, tk)
                if need <= _TILE_BUDGET:
                    return tm, tn, tk
    return last


# --------------------------------------------------------------------------- kernels

def _resident_pairwise_kernel(x_ref, y_ref, o_ref, *, inv_temp, eps2):
    # x_ref: (tm, H) tile; y_ref: (C, H) resident block; o_ref: (tm, C).
    x = x_ref[...]
    y = y_ref[...]
    # MXU: raw-dtype operands (bf16 stays native), f32 accumulation.
    acc = lax.dot_general(x, y, dimension_numbers=(((1,), (1,)), ((), ())),
                          preferred_element_type=jnp.float32)
    # Inverse norms on the VPU/XLU/EUP: overlaps the MXU; recomputed per step so
    # the grid axis stays stateless (safe to shard across TensorCores).
    xf = x.astype(jnp.float32)
    yf = y.astype(jnp.float32)
    inv_x = lax.rsqrt(jnp.maximum(jnp.sum(xf * xf, axis=-1, keepdims=True), eps2))  # (tm,1)
    inv_y = lax.rsqrt(jnp.maximum(jnp.sum(yf * yf, axis=-1, keepdims=True), eps2))  # (C,1)
    o_ref[...] = (acc * inv_x * jnp.transpose(inv_y) * inv_temp).astype(o_ref.dtype)


def _tiled_pairwise_kernel(x_ref, y_ref, ix_ref, iy_ref, o_ref, acc_ref, *, inv_temp):
    # x_ref: (tm, tk); y_ref: (tn, tk); ix_ref: (tm, 1); iy_ref: (1, tn);
    # o_ref: (tm, tn); acc_ref: (tm, tn) f32 scratch.
    @pl.when(pl.program_id(2) == 0)
    def _():
        acc_ref[...] = jnp.zeros_like(acc_ref)

    acc_ref[...] += lax.dot_general(
        x_ref[...], y_ref[...],
        dimension_numbers=(((1,), (1,)), ((), ())),      # contract the H axis of both
        preferred_element_type=jnp.float32)

    @pl.when(pl.program_id(2) == pl.num_programs(2) - 1)
    def _():
        o_ref[...] = (acc_ref[...] * ix_ref[...] * iy_ref[...] * inv_temp
                      ).astype(o_ref.dtype)


def _inv_norm_kernel(x_ref, o_ref, *, eps2):
    # x_ref: (tm, H) tile; o_ref: (1, tm) lane-dense inverse norms.
    x = x_ref[...].astype(jnp.float32)
    ss = jnp.sum(x * x, axis=-1, keepdims=True)          # (tm, 1)
    o_ref[...] = jnp.transpose(lax.rsqrt(jnp.maximum(ss, eps2)))


def _cosine_rows_kernel(x_ref, y_ref, o_ref, *, inv_temp, eps2):
    # x_ref, y_ref: (tm, H) tiles; o_ref: (1, tm) lane-dense output tile.
    x = x_ref[...].astype(jnp.float32)
    y = y_ref[...].astype(jnp.float32)
    dot = jnp.sum(x * y, axis=-1, keepdims=True)
    sx = jnp.sum(x * x, axis=-1, keepdims=True)
    sy = jnp.sum(y * y, axis=-1, keepdims=True)
    res = (dot
           * lax.rsqrt(jnp.maximum(sx, eps2))            # rsqrt -> EUP, no divides
           * lax.rsqrt(jnp.maximum(sy, eps2))
           * inv_temp)                                    # (tm, 1)
    o_ref[...] = jnp.transpose(res).astype(o_ref.dtype)  # tiny transpose rides the XLU


# ------------------------------------------------------------------------ wrappers

def _inv_norms(rows, eps):
    """rows: (R, H) -> (1, R) f32 of 1 / max(||row||, eps)."""
    r, h = rows.shape
    tm = _pick_row_tile(r, h, rows.dtype.itemsize, n_arrays=1)
    kernel = functools.partial(_inv_norm_kernel, eps2=float(eps) * float(eps))
    return pl.pallas_call(
        kernel,
        out_shape=jax.ShapeDtypeStruct((1, r), jnp.float32),
        grid_spec=pltpu.PrefetchScalarGridSpec(
            num_scalar_prefetch=0,
            grid=(pl.cdiv(r, tm),),
            in_specs=[pl.BlockSpec((tm, h), lambda i: (i, 0))],
            out_specs=pl.BlockSpec((1, tm), lambda i: (0, i)),
        ),
        compiler_params=pltpu.CompilerParams(
            dimension_semantics=("parallel",),
            vmem_limit_bytes=_VMEM_LIMIT,
        ),
    )(rows)


def _pairwise_resident(x_rows, y_rows, temp, eps, tm):
    """x:(B,H), y:(C,H) -> (B,C); fused norms, y resident across the M grid."""
    b, h = x_rows.shape
    c, _ = y_rows.shape
    kernel = functools.partial(_resident_pairwise_kernel,
                               inv_temp=1.0 / float(temp),
                               eps2=float(eps) * float(eps))
    return pl.pallas_call(
        kernel,
        out_shape=jax.ShapeDtypeStruct((b, c), jnp.float32),
        grid_spec=pltpu.PrefetchScalarGridSpec(
            num_scalar_prefetch=0,
            grid=(pl.cdiv(b, tm),),
            in_specs=[
                pl.BlockSpec((tm, h), lambda i: (i, 0)),
                pl.BlockSpec((c, h), lambda i: (0, 0)),   # constant index: fetched once
            ],
            out_specs=pl.BlockSpec((tm, c), lambda i: (i, 0)),
        ),
        compiler_params=pltpu.CompilerParams(
            dimension_semantics=("parallel",),
            vmem_limit_bytes=_VMEM_LIMIT,
        ),
    )(x_rows, y_rows)


def _pairwise_tiled(x_rows, y_rows, temp, eps):
    """x:(B,H), y:(C,H) -> (B,C); K/N-tiled MXU matmul, norms fused into epilogue."""
    b, h = x_rows.shape
    c, _ = y_rows.shape
    it = x_rows.dtype.itemsize

    # Tiny inverse-norm vectors (one extra read of x/y); applied at k == last.
    inv_x = _inv_norms(x_rows, eps).reshape(b, 1)          # (b, 1) f32, free reshape
    inv_y = _inv_norms(y_rows, eps)                        # (1, c) f32

    # Zero-pad H to a multiple of 128 only when needed (zeros are exact for the dot).
    if h % 128:
        hp = _round_up(h, 128)
        x_rows = jnp.pad(x_rows, ((0, 0), (0, hp - h)))
        y_rows = jnp.pad(y_rows, ((0, 0), (0, hp - h)))
        h = hp

    tm, tn, tk = _fit_mm_tiles(b, c, h, it)
    gm, gn, gk = pl.cdiv(b, tm), pl.cdiv(c, tn), h // tk

    kernel = functools.partial(_tiled_pairwise_kernel, inv_temp=1.0 / float(temp))
    return pl.pallas_call(
        kernel,
        out_shape=jax.ShapeDtypeStruct((b, c), jnp.float32),
        grid_spec=pltpu.PrefetchScalarGridSpec(
            num_scalar_prefetch=0,
            grid=(gm, gn, gk),
            in_specs=[
                pl.BlockSpec((tm, tk), lambda i, j, k: (i, k)),
                pl.BlockSpec((tn, tk), lambda i, j, k: (j, k)),
                pl.BlockSpec((tm, 1), lambda i, j, k: (i, 0)),
                pl.BlockSpec((1, tn), lambda i, j, k: (0, j)),
            ],
            out_specs=pl.BlockSpec((tm, tn), lambda i, j, k: (i, j)),
            scratch_shapes=[pltpu.VMEM((tm, tn), jnp.float32)],
        ),
        compiler_params=pltpu.CompilerParams(
            dimension_semantics=("parallel", "parallel", "arbitrary"),
            vmem_limit_bytes=_VMEM_LIMIT,
        ),
    )(x_rows, y_rows, inv_x, inv_y)


def _pairwise_similarity(x_rows, y_rows, temp, eps):
    dt = jnp.promote_types(x_rows.dtype, y_rows.dtype)
    x_rows = x_rows.astype(dt)
    y_rows = y_rows.astype(dt)
    b, h = x_rows.shape
    c, _ = y_rows.shape
    tm = _fit_resident_tile(b, c, h, dt.itemsize)
    if tm is not None:
        return _pairwise_resident(x_rows, y_rows, temp, eps, tm)
    return _pairwise_tiled(x_rows, y_rows, temp, eps)


def _elementwise_similarity(xf, yf, temp, eps):
    """xf, yf: (M, H) same shape -> (1, M) per-row cosine similarity / temp."""
    m, h = xf.shape
    it = max(xf.dtype.itemsize, yf.dtype.itemsize)
    tm = _pick_row_tile(m, h, it, n_arrays=2)
    kernel = functools.partial(_cosine_rows_kernel,
                               inv_temp=1.0 / float(temp),
                               eps2=float(eps) * float(eps))
    return pl.pallas_call(
        kernel,
        out_shape=jax.ShapeDtypeStruct((1, m), jnp.float32),
        grid_spec=pltpu.PrefetchScalarGridSpec(
            num_scalar_prefetch=0,
            grid=(pl.cdiv(m, tm),),
            in_specs=[
                pl.BlockSpec((tm, h), lambda i: (i, 0)),
                pl.BlockSpec((tm, h), lambda i: (i, 0)),
            ],
            out_specs=pl.BlockSpec((1, tm), lambda i: (0, i)),
        ),
        compiler_params=pltpu.CompilerParams(
            dimension_semantics=("parallel",),
            vmem_limit_bytes=_VMEM_LIMIT,
        ),
    )(xf, yf)


def similarity(x, y, temp, *, eps=_DEF_EPS):
    """forward(x, y) = CosineSimilarity(dim=-1)(x, y) / temp (PyTorch semantics)."""
    x = jnp.asarray(x)
    y = jnp.asarray(y)

    # SimCSE pairwise pattern: (B,1,H) x (1,C,H) -> (B,C): normalized MXU matmul,
    # never materializing the O(B*C*H) broadcast.
    if x.ndim == 3 and y.ndim == 3 and x.shape[-1] == y.shape[-1]:
        if x.shape[1] == 1 and y.shape[0] == 1:
            return _pairwise_similarity(x[:, 0, :], y[0], temp, eps)
        if x.shape[0] == 1 and y.shape[1] == 1:
            return _pairwise_similarity(y[:, 0, :], x[0], temp, eps)

    # General path: same-shape row-wise cosine (broadcast only as a rare fallback).
    if x.shape == y.shape:
        xb, yb = x, y
    else:
        xb, yb = jnp.broadcast_arrays(x, y)
    batch_shape = xb.shape[:-1]
    h = xb.shape[-1]
    m = int(math.prod(batch_shape)) if batch_shape else 1
    sims = _elementwise_similarity(xb.reshape(m, h), yb.reshape(m, h), temp, eps)
    return sims.reshape(batch_shape)


if __name__ == "__main__":
    temp = 0.05
    eps = 1e-8
    key = jax.random.PRNGKey(0)
    kx, ky, ka, kb = jax.random.split(key, 4)

    # 1) SimCSE usage: x (B,1,H), y (1,B,H) -> sims (B,B)  [fused resident-y MXU path]
    B, H = 8, 32
    x = jax.random.normal(kx, (B, 1, H), dtype=jnp.float32)
    y = jax.random.normal(ky, (1, B, H), dtype=jnp.float32)
    sims = similarity(x, y, temp)
    jax.block_until_ready(sims)

    xb, yb = jnp.broadcast_arrays(x, y)
    ref = (jnp.sum(xb * yb, axis=-1)
           / (jnp.maximum(jnp.linalg.norm(xb, axis=-1), eps)
              * jnp.maximum(jnp.linalg.norm(yb, axis=-1), eps)) / temp)
    assert sims.shape == (B, B)
    assert jnp.allclose(sims, ref, atol=1e-4, rtol=1e-4)

    # 1b) Explicitly exercise the K/N-tiled large-shape fallback (epilogue scaling).
    sims_t = _pairwise_tiled(x[:, 0, :], y[0], temp, eps)
    jax.block_until_ready(sims_t)
    assert sims_t.shape == (B, B)
    assert jnp.allclose(sims_t, ref, atol=1e-4, rtol=1e-4)

    # 2) Elementwise usage: same-shape inputs -> per-row similarity  [row-wise path]
    a = jax.random.normal(ka, (2, 8, H), dtype=jnp.float32)
    b = jax.random.normal(kb, (2, 8, H), dtype=jnp.float32)
    sims2 = similarity(a, b, temp)
    jax.block_until_ready(sims2)

    ref2 = (jnp.sum(a * b, axis=-1)
            / (jnp.maximum(jnp.linalg.norm(a, axis=-1), eps)
               * jnp.maximum(jnp.linalg.norm(b, axis=-1), eps)) / temp)
    assert sims2.shape == (2, 8)
    assert jnp.allclose(sims2, ref2, atol=1e-4, rtol=1e-4)

    print("KERNEL_OK")
</pallas_src>

<mosaic_0001>
module attributes {stable_mosaic.version = 11 : i64} {
  func.func @_resident_pairwise_kernel(%arg0: i32, %arg1: memref<8x32xf32, #tpu.memory_space<vmem>>, %arg2: memref<8x32xf32, #tpu.memory_space<vmem>>, %arg3: memref<8x8xf32, #tpu.memory_space<vmem>>) attributes {dimension_semantics = [#tpu.dimension_semantics<parallel>], iteration_bounds = array<i64: 1>, scalar_prefetch = 0 : i64, scratch_operands = 0 : i64, tpu.core_type = #tpu.core_type<tc>, window_params = [{transform_indices = @transform_0, window_bounds = array<i64: 8, 32>}, {pipeline_mode = #tpu.pipeline_mode<synchronous>, transform_indices = @transform_1, window_bounds = array<i64: 8, 32>}, {transform_indices = @transform_2, window_bounds = array<i64: 8, 8>}]} {
    %c0 = arith.constant 0 : index
    %c0_0 = arith.constant 0 : index
    %0 = vector.load %arg1[%c0, %c0_0] : memref<8x32xf32, #tpu.memory_space<vmem>>, vector<8x32xf32>
    %c0_1 = arith.constant 0 : index
    %c0_2 = arith.constant 0 : index
    %1 = vector.load %arg2[%c0_1, %c0_2] : memref<8x32xf32, #tpu.memory_space<vmem>>, vector<8x32xf32>
    %cst = arith.constant dense<0.000000e+00> : vector<8x8xf32>
    %2 = tpu.matmul %0, %1, %cst {dimension_numbers = #tpu.dot_dimension_numbers<[1], [1], [0], [0], [0, 0, 1, 0], [], []>} : vector<8x32xf32>, vector<8x32xf32>, vector<8x8xf32> -> vector<8x8xf32>
    %3 = arith.mulf %0, %0 : vector<8x32xf32>
    %cst_3 = arith.constant dense<0.000000e+00> : vector<8xf32>
    %4 = vector.multi_reduction <add>, %3, %cst_3 [1] : vector<8x32xf32> to vector<8xf32>
    %5 = vector.shape_cast %4 : vector<8xf32> to vector<8x1xf32>
    %cst_4 = arith.constant 1.000000e-16 : f32
    %6 = vector.broadcast %cst_4 : f32 to vector<8x1xf32>
    %7 = arith.maximumf %5, %6 : vector<8x1xf32>
    %8 = math.rsqrt %7 : vector<8x1xf32>
    %9 = arith.mulf %1, %1 : vector<8x32xf32>
    %cst_5 = arith.constant dense<0.000000e+00> : vector<8xf32>
    %10 = vector.multi_reduction <add>, %9, %cst_5 [1] : vector<8x32xf32> to vector<8xf32>
    %11 = vector.shape_cast %10 : vector<8xf32> to vector<8x1xf32>
    %cst_6 = arith.constant 1.000000e-16 : f32
    %12 = vector.broadcast %cst_6 : f32 to vector<8x1xf32>
    %13 = arith.maximumf %11, %12 : vector<8x1xf32>
    %14 = math.rsqrt %13 : vector<8x1xf32>
    %15 = vector.broadcast %8 : vector<8x1xf32> to vector<8x8xf32>
    %16 = arith.mulf %2, %15 : vector<8x8xf32>
    %17 = tpu.transpose %14, [1, 0] : vector<8x1xf32> -> vector<1x8xf32>
    %18 = vector.broadcast %17 : vector<1x8xf32> to vector<8x8xf32>
    %19 = arith.mulf %16, %18 : vector<8x8xf32>
    %cst_7 = arith.constant 2.000000e+01 : f32
    %20 = vector.broadcast %cst_7 : f32 to vector<8x8xf32>
    %21 = arith.mulf %19, %20 : vector<8x8xf32>
    %c0_8 = arith.constant 0 : index
    %c0_9 = arith.constant 0 : index
    %22 = vector.load %arg3[%c0_8, %c0_9] : memref<8x8xf32, #tpu.memory_space<vmem>>, vector<8x8xf32>
    tpu.vector_store %arg3[%c0_8, %c0_9], %21 {strides = array<i32>} : memref<8x8xf32, #tpu.memory_space<vmem>>, vector<8x8xf32>,
    return
  }
  func.func @transform_0(%arg0: i32) -> (i32, i32) {
    %c0_i32 = arith.constant 0 : i32
    %c0_i32_0 = arith.constant 0 : i32
    return %arg0, %c0_i32 : i32, i32
  }
  func.func @transform_1(%arg0: i32) -> (i32, i32) {
    %c0_i32 = arith.constant 0 : i32
    %c0_i32_0 = arith.constant 0 : i32
    %c0_i32_1 = arith.constant 0 : i32
    return %c0_i32, %c0_i32_0 : i32, i32
  }
  func.func @transform_2(%arg0: i32) -> (i32, i32) {
    %c0_i32 = arith.constant 0 : i32
    %c0_i32_0 = arith.constant 0 : i32
    return %arg0, %c0_i32 : i32, i32
  }
}

</mosaic_0001>

<bundles_post_ra>
// kernel: tpu_custom_call.1
= control target key start
LH: loop header
LB: loop body
LE: loop exit
PB: predicated region body
PF: predicated region fallthrough
CT: control target
= control target key end

     0   :  { %7 = vsyncpa [#allocation3], 0  ;;  %s330_s0 = inlined_call_operand.hbm [shape: f32[8,32], index: 0, kind: input, shape index: {}]   ;;  %s331_s1 = inlined_call_operand.hbm [shape: f32[8,32], index: 1, kind: input, shape index: {}]   ;;  %s332_s2 = inlined_call_operand.hbm [shape: f32[8,8], index: 2, kind: output, shape index: {}]  }
   0x1   :  { %8 = vsyncpa [#allocation6], 0 }
   0x2   :  { %9 = vsyncpa [#allocation4], 0  ;;  %s274_s9 = smov [#allocation2]   ;;  %s275_s11 = smov [#allocation5]  }
   0x3   :  { %s16_s10 = sshll.u32 %s274_s9, 4  ;;  %s26_s12 = sshll.u32 %s275_s11, 4  ;;  %s17_s10 = int_to_ptr.vmem [resolvable:$true] %s16_s10  ;;  %s27_s12 = int_to_ptr.vmem [resolvable:$true] %s26_s12 }
   0x4   :  { %s202_s15 = scalar_lea.hbm %s330_s0, 128 }
   0x5   :  { %p203_p0 = scmp.ne.s32.totalorder %s330_s0, %s202_s15  ;;  %p206_p1 = scmp.lt.u32.totalorder %s202_s15, %s330_s0 }
   0x7   :  { %p208_p2 = pnand %p206_p1, %p203_p0 }
   0x9   :  { %211 = shalt.err (!%p208_p2)
}
   0xa   :  { %s212_s20 = scalar_lea.vmem %s17_s10, 128  ;;  %p217_p4 = scmp.lt.s32.totalorder %s17_s10, %s17_s10 }
   0xb   :  { %p213_p3 = scmp.ne.s32.totalorder %s17_s10, %s212_s20  ;;  %p218_p5 = scmp.lt.s32.totalorder %s212_s20, %s212_s20 }
   0xd   :  { %p219_p6 = por %p218_p5, %p217_p4 }
   0xf   :  { %p220_p7 = pnand %p219_p6, %p213_p3 }
  0x11   :  { %223 = shalt.err (!%p220_p7)
}
  0x12   :  { %19 = dma.hbm_to_vmem [thread:$0]  %s330_s0, 128, %s17_s10, [#allocation3]  }
  0x13   :  { %s224_s25 = scalar_lea.hbm %s331_s1, 128 }
  0x14   :  { %p225_p8 = scmp.ne.s32.totalorder %s331_s1, %s224_s25  ;;  %p228_p9 = scmp.lt.u32.totalorder %s224_s25, %s331_s1 }
  0x16   :  { %p230_p10 = pnand %p228_p9, %p225_p8 }
  0x18   :  { %233 = shalt.err (!%p230_p10)
}
  0x19   :  { %s234_s30 = scalar_lea.vmem %s27_s12, 128  ;;  %p239_p12 = scmp.lt.s32.totalorder %s27_s12, %s27_s12 }
  0x1a   :  { %p235_p11 = scmp.ne.s32.totalorder %s27_s12, %s234_s30  ;;  %p240_p13 = scmp.lt.s32.totalorder %s234_s30, %s234_s30 }
  0x1c   :  { %p241_p0 = por %p240_p13, %p239_p12 }
  0x1e   :  { %p242_p1 = pnand %p241_p0, %p235_p11 }
  0x20   :  { %245 = shalt.err (!%p242_p1)
}
  0x21   :  { %29 = dma.hbm_to_vmem [thread:$0]  %s331_s1, 128, %s27_s12, [#allocation6]  }
  0x22   :  { %268 = dma.done.wait [#allocation3], 128  }
  0x23   :  { %269 = vsyncadd [#allocation3], 4294967168 }
  0x24   :  { %270 = dma.done.wait [#allocation6], 128  }
  0x25   :  { %271 = vsyncadd [#allocation6], 4294967168  ;;  %v276_v0 = vmov 0.0   ;;  %vm277_vm0 = vmmov 0   ;;  %v37_v1 = vld [vmem:[#allocation5] sm:$0xff]  ;;  %vm38_vm1 = vcmask 261120   ;;  %v160_v14 = vlaneseq }
  0x26   :  { %188 = vmatprep.subr.mxu0 %v276_v0  ;;  %190 = vmatprep.mubr.msk.f32.mxu0 %vm277_vm0, %v276_v0  ;;  %v36_v2 = vld [vmem:[#allocation2] sm:$0xff]  ;;  %v121_v3 = vmul.f32 %v37_v1, %v37_v1  ;;  %s278_s1 = smov [#allocation7]   ;;  %vm166_vm2 = vcmask 64512  }
  0x27   :  { %189 = vmatpush3.xpose.msk.msra.mxu0 %vm38_vm1, %v37_v1  ;;  %v115_v4 = vmul.f32 %v36_v2, %v36_v2  ;;  %v161_v15 = vshrl.u32 %v160_v14, 7  ;;  %s174_s4 = sshll.u32 %s278_s1, 4  ;;  %s175_s4 = int_to_ptr.vmem [resolvable:$true] %s174_s4 }
  0x28   :  { %v122_v5 = vsel %vm38_vm1, %v121_v3, 0.0  ;;  %s246_s5 = scalar_lea.vmem %s175_s4, 128  ;;  %p251_p3 = scmp.lt.s32.totalorder %s175_s4, %s175_s4 }
  0x29   :  { %123 = vadd.xlane.f32.xlu0 %v122_v5  ;;  %v116_v6 = vsel %vm38_vm1, %v115_v4, 0.0  ;;  %v162_v17 = vsub.s32 0, %v161_v15  ;;  %p247_p2 = scmp.ne.s32.totalorder %s175_s4, %s246_s5  ;;  %p252_p4 = scmp.lt.s32.totalorder %s246_s5, %s246_s5 }
  0x2a   :  { %191 = vmatmul.mubr.msk.f32.vlgmr.msra.gmra.mrb[0].mxu0 %vm38_vm1, %v36_v2 }
  0x2b   :  { %p253_p5 = por %p252_p4, %p251_p3 }
  0x2d   :  { %117 = vadd.xlane.f32.xlu0 %v116_v6  ;;  %p254_p6 = pnand %p253_p5, %p247_p2 }
  0xb6   :  { %v124_v7 = vpop.xlane.xlu0 %123 }
  0xb7   :  { %v125_v8 = vmax.f32 %v124_v7, 1e-16 }
  0xb9   :  { %198 = vrsqrt.f32 %v125_v8 }
  0xba   :  { %v118_v12 = vpop.xlane.xlu0 %117 }
  0xbb   :  { %v119_v13 = vmax.f32 %v118_v12, 1e-16 }
  0xbd   :  { %200 = vrsqrt.f32 %v119_v13 }
  0xc3   :  { %v199_v9 = vpop.eup %198 }
  0xc4   :  { %128 = vxpose.xlu1.b32.start.end [1/1] (short) (narrow) %v199_v9, 8 }
  0xc7   :  { %v201_v16 = vpop.eup %200 }
  0xfd   :  { %v111_v10 = vpop.f32.mrb[0].mxu0 }
  0xfe   :  { %v192_v11 = vpop.f32.mrb[1].mxu0  ;;  %v127_v18 = vmul.f32 %v201_v16, %v111_v10 }
 0x144   :  { %v144_v19 = vpop.trf.xlu1 }
 0x145   :  { %v163_v20 = vrot.slane %v144_v19, %v162_v17 }
 0x147   :  { %v164_v21 = vmul.f32 %v163_v20, %v127_v18 }
 0x149   :  { %v165_v22 = vmul.f32 20.0, %v164_v21 }
 0x14b   :  { %167 = vst.msk [vmem:[#allocation7] sm:$0xff] %vm166_vm2, %v165_v22 }
 0x14c   :  { %257 = shalt.err (!%p254_p6)
}
 0x14d   :  { %s258_s8 = scalar_lea.hbm %s332_s2, 128 }
 0x14e   :  { %p259_p7 = scmp.ne.s32.totalorder %s332_s2, %s258_s8  ;;  %p262_p8 = scmp.lt.u32.totalorder %s258_s8, %s332_s2 }
 0x150   :  { %p264_p9 = pnand %p262_p8, %p259_p7 }
 0x152   :  { %267 = shalt.err (!%p264_p9)
}
 0x153   :  { %177 = dma.vmem_to_hbm [thread:$0]  %s175_s4, 128, %s332_s2, [#allocation4]  }
 0x154   :  { %272 = dma.done.wait [#allocation4], 128  }
 0x155   :  { %273 = vsyncadd [#allocation4], 4294967168 }
 0x156   :  { %181 = vsyncpa [#allocation3], 1 }
 0x157   :  { %182 = vsyncpa [#allocation6], 1 }
 0x158   :  { %183 = vsyncpa [#allocation4], 1 }

</bundles_post_ra>
